<compile_context>
chip_gen: v7x
topology: tpu7x:2x2x1
jax: 0.10.0
libtpu: 0.0.40
codegen_flags: <defaults>
</compile_context>

<pallas_src>
import functools

import jax
import jax.numpy as jnp
from jax.experimental import pallas as pl
from jax.experimental.pallas import tpu as pltpu

_LANE = 128          # TPU lane width; pad feature dims to this for lane-dense tiles.
_BATCH_TILE = 128    # batch tile used when the grid path kicks in.


def _round_up(n: int, m: int) -> int:
    return ((n + m - 1) // m) * m


def _make_fused_mlp_kernel(num_layers: int):
    """kernel(x_ref, w_stack_ref, b_stack_ref, o_ref).

    x_ref:       (Bt, P)    f32
    w_stack_ref: (L, P, P)  bf16   (layer l weight at w_stack_ref[l])
    b_stack_ref: (L, 1, P)  f32
    o_ref:       (Bt, P)    f32
    """

    def kernel(x_ref, w_ref, b_ref, o_ref):
        x = x_ref[...]                                   # f32 activation
        for l in range(num_layers):                      # static unroll (traced once)
            y = jnp.dot(x.astype(jnp.bfloat16), w_ref[l],
                        preferred_element_type=jnp.float32)
            x = jnp.maximum(y + b_ref[l], 0.0)           # f32 bias + ReLU epilogue
        o_ref[...] = x.astype(o_ref.dtype)

    return kernel


def fused_mlp(x_padded, w_stack, b_stack):
    """Full MLP in one pallas_call with VMEM-resident packed weights.

    x_padded: (B, P) f32, P % 128 == 0
    w_stack:  (L, P, P) bf16
    b_stack:  (L, 1, P) f32
    Returns (B, P) f32 (still padded).
    """
    B, P = x_padded.shape
    L = w_stack.shape[0]
    kernel = _make_fused_mlp_kernel(L)

    w_bytes = L * P * P * 2
    b_bytes = L * 1 * P * 4
    x_bytes = B * P * 4
    o_bytes = B * P * 4

    cost = pl.CostEstimate(
        flops=2 * B * L * P * P,
        transcendentals=0,
        bytes_accessed=w_bytes + b_bytes + x_bytes + o_bytes,
    )
    # Headroom for double-buffering / intermediates; clamp inside physical VMEM.
    vmem_limit = int(min(max(2 * (w_bytes + b_bytes + x_bytes + o_bytes) + (1 << 20),
                             32 * 1024 * 1024),
                         100 * 1024 * 1024))

    out_shape = jax.ShapeDtypeStruct((B, P), x_padded.dtype)

    if B >= 2 * _BATCH_TILE and B % _BATCH_TILE == 0:
        # Batch-tiled grid: rows split across TensorCores on v7x; weights/biases
        # keep the same block index every step so they are fetched once.
        grid = (B // _BATCH_TILE,)
        return pl.pallas_call(
            kernel,
            out_shape=out_shape,
            grid=grid,
            in_specs=[
                pl.BlockSpec((_BATCH_TILE, P), lambda i: (i, 0)),
                pl.BlockSpec((L, P, P), lambda i: (0, 0, 0)),
                pl.BlockSpec((L, 1, P), lambda i: (0, 0, 0)),
            ],
            out_specs=pl.BlockSpec((_BATCH_TILE, P), lambda i: (i, 0)),
            compiler_params=pltpu.CompilerParams(
                dimension_semantics=("parallel",),
                vmem_limit_bytes=vmem_limit),
            cost_estimate=cost,
        )(x_padded, w_stack, b_stack)

    # Small batch: single ungridded invocation, everything VMEM-resident.
    vmem_spec = pl.BlockSpec(memory_space=pltpu.MemorySpace.VMEM)
    return pl.pallas_call(
        kernel,
        out_shape=out_shape,
        in_specs=[vmem_spec, vmem_spec, vmem_spec],
        out_specs=vmem_spec,
        compiler_params=pltpu.CompilerParams(vmem_limit_bytes=vmem_limit),
        cost_estimate=cost,
    )(x_padded, w_stack, b_stack)


def init_params(key, input_size, hidden_sizes):
    """Deterministic init mimicking torch.nn.Linear (uniform +-1/sqrt(fan_in)).

    Weights are stored as (in, out) — transpose of torch's (out, in).
    """
    params = []
    in_sizes = [input_size] + list(hidden_sizes[:-1])
    for fan_in, fan_out in zip(in_sizes, hidden_sizes):
        key, kw, kb = jax.random.split(key, 3)
        bound = 1.0 / (fan_in ** 0.5)
        w = jax.random.uniform(kw, (fan_in, fan_out), jnp.float32, -bound, bound)
        b = jax.random.uniform(kb, (fan_out,), jnp.float32, -bound, bound)
        params.append((w, b))
    return params


def pack_params(params):
    """Zero-pad every layer to a uniform lane-dense width P and stack.

    Uniform zero padding is numerically inert: padded activation columns stay
    exactly 0 through every Linear+ReLU, and padded weight rows multiply only
    those zero columns.  Weights -> (L, P, P) bf16, biases -> (L, 1, P) f32.
    """
    dims = [params[0][0].shape[0]] + [w.shape[1] for w, _ in params]
    P = max(_round_up(d, _LANE) for d in dims)
    L = len(params)
    w_stack = jnp.zeros((L, P, P), jnp.bfloat16)
    b_stack = jnp.zeros((L, 1, P), jnp.float32)
    for l, (w, b) in enumerate(params):
        fi, fo = w.shape
        w_stack = w_stack.at[l, :fi, :fo].set(w.astype(jnp.bfloat16))
        b_stack = b_stack.at[l, 0, :fo].set(b)
    return w_stack, b_stack


@functools.partial(jax.jit, static_argnames=("out_features",))
def net_forward(x, w_stack, b_stack, out_features):
    """Forward pass of Net: (Linear -> ReLU) for every layer, one fused kernel."""
    B, in_features = x.shape
    P = w_stack.shape[-1]
    x_p = jnp.zeros((B, P), jnp.float32).at[:, :in_features].set(x)
    y_p = fused_mlp(x_p, w_stack, b_stack)
    return y_p[:, :out_features]


if __name__ == "__main__":
    key = jax.random.PRNGKey(0)

    batch = 8
    input_size = 32
    hidden_sizes = [64, 128, 32]

    key, kx, kp = jax.random.split(key, 3)
    x = jax.random.normal(kx, (batch, input_size), jnp.float32)
    params = init_params(kp, input_size, hidden_sizes)
    w_stack, b_stack = pack_params(params)

    out = net_forward(x, w_stack, b_stack, out_features=hidden_sizes[-1])
    jax.block_until_ready(out)
    assert out.shape == (batch, hidden_sizes[-1])

    # Reference 1: same bf16-matmul / f32-accumulate scheme in plain JAX (tight).
    ref_bf16 = x
    for w, b in params:
        y = jnp.dot(ref_bf16.astype(jnp.bfloat16), w.astype(jnp.bfloat16),
                    preferred_element_type=jnp.float32)
        ref_bf16 = jnp.maximum(y + b, 0.0)
    assert jnp.allclose(out, ref_bf16, atol=1e-3, rtol=1e-3)

    # Reference 2: full f32 math (semantic check vs. the torch module; loose
    # tolerance only reflects the deliberate bf16 weight quantization).
    ref_f32 = x
    for w, b in params:
        ref_f32 = jnp.maximum(ref_f32 @ w + b, 0.0)
    assert jnp.allclose(out, ref_f32, atol=5e-2, rtol=5e-2)

    print("KERNEL_OK")
</pallas_src>

<mosaic_0001>
module attributes {stable_mosaic.version = 11 : i64} {
  func.func @kernel(%arg0: memref<8x128xf32, #tpu.memory_space<vmem>>, %arg1: memref<3x128x128xbf16, #tpu.memory_space<vmem>>, %arg2: memref<3x1x128xf32, #tpu.memory_space<vmem>>, %arg3: memref<8x128xf32, #tpu.memory_space<vmem>>) attributes {dimension_semantics = [], scalar_prefetch = 0 : i64, scratch_operands = 0 : i64, tpu.core_type = #tpu.core_type<tc>} {
    %c0 = arith.constant 0 : index
    %c0_0 = arith.constant 0 : index
    %0 = vector.load %arg0[%c0, %c0_0] : memref<8x128xf32, #tpu.memory_space<vmem>>, vector<8x128xf32>
    %1 = arith.truncf %0 : vector<8x128xf32> to vector<8x128xbf16>
    %c0_1 = arith.constant 0 : index
    %c0_2 = arith.constant 0 : index
    %c0_3 = arith.constant 0 : index
    %2 = vector.load %arg1[%c0_1, %c0_2, %c0_3] : memref<3x128x128xbf16, #tpu.memory_space<vmem>>, vector<1x128x128xbf16>
    %3 = vector.shape_cast %2 : vector<1x128x128xbf16> to vector<128x128xbf16>
    %cst = arith.constant dense<0.000000e+00> : vector<8x128xf32>
    %4 = tpu.matmul %1, %3, %cst {dimension_numbers = #tpu.dot_dimension_numbers<[1], [0], [0], [1], [0, 0, 1, 1], [], []>} : vector<8x128xbf16>, vector<128x128xbf16>, vector<8x128xf32> -> vector<8x128xf32>
    %c0_4 = arith.constant 0 : index
    %c0_5 = arith.constant 0 : index
    %c0_6 = arith.constant 0 : index
    %5 = vector.load %arg2[%c0_4, %c0_5, %c0_6] : memref<3x1x128xf32, #tpu.memory_space<vmem>>, vector<1x1x128xf32>
    %6 = vector.shape_cast %5 : vector<1x1x128xf32> to vector<1x128xf32>
    %7 = vector.broadcast %6 : vector<1x128xf32> to vector<8x128xf32>
    %8 = arith.addf %4, %7 : vector<8x128xf32>
    %cst_7 = arith.constant 0.000000e+00 : f32
    %9 = vector.broadcast %cst_7 : f32 to vector<8x128xf32>
    %10 = arith.maximumf %8, %9 : vector<8x128xf32>
    %11 = arith.truncf %10 : vector<8x128xf32> to vector<8x128xbf16>
    %c1 = arith.constant 1 : index
    %c0_8 = arith.constant 0 : index
    %c0_9 = arith.constant 0 : index
    %12 = vector.load %arg1[%c1, %c0_8, %c0_9] : memref<3x128x128xbf16, #tpu.memory_space<vmem>>, vector<1x128x128xbf16>
    %13 = vector.shape_cast %12 : vector<1x128x128xbf16> to vector<128x128xbf16>
    %cst_10 = arith.constant dense<0.000000e+00> : vector<8x128xf32>
    %14 = tpu.matmul %11, %13, %cst_10 {dimension_numbers = #tpu.dot_dimension_numbers<[1], [0], [0], [1], [0, 0, 1, 1], [], []>} : vector<8x128xbf16>, vector<128x128xbf16>, vector<8x128xf32> -> vector<8x128xf32>
    %c1_11 = arith.constant 1 : index
    %c0_12 = arith.constant 0 : index
    %c0_13 = arith.constant 0 : index
    %15 = vector.load %arg2[%c1_11, %c0_12, %c0_13] : memref<3x1x128xf32, #tpu.memory_space<vmem>>, vector<1x1x128xf32>
    %16 = vector.shape_cast %15 : vector<1x1x128xf32> to vector<1x128xf32>
    %17 = vector.broadcast %16 : vector<1x128xf32> to vector<8x128xf32>
    %18 = arith.addf %14, %17 : vector<8x128xf32>
    %cst_14 = arith.constant 0.000000e+00 : f32
    %19 = vector.broadcast %cst_14 : f32 to vector<8x128xf32>
    %20 = arith.maximumf %18, %19 : vector<8x128xf32>
    %21 = arith.truncf %20 : vector<8x128xf32> to vector<8x128xbf16>
    %c2 = arith.constant 2 : index
    %c0_15 = arith.constant 0 : index
    %c0_16 = arith.constant 0 : index
    %22 = vector.load %arg1[%c2, %c0_15, %c0_16] : memref<3x128x128xbf16, #tpu.memory_space<vmem>>, vector<1x128x128xbf16>
    %23 = vector.shape_cast %22 : vector<1x128x128xbf16> to vector<128x128xbf16>
    %cst_17 = arith.constant dense<0.000000e+00> : vector<8x128xf32>
    %24 = tpu.matmul %21, %23, %cst_17 {dimension_numbers = #tpu.dot_dimension_numbers<[1], [0], [0], [1], [0, 0, 1, 1], [], []>} : vector<8x128xbf16>, vector<128x128xbf16>, vector<8x128xf32> -> vector<8x128xf32>
    %c2_18 = arith.constant 2 : index
    %c0_19 = arith.constant 0 : index
    %c0_20 = arith.constant 0 : index
    %25 = vector.load %arg2[%c2_18, %c0_19, %c0_20] : memref<3x1x128xf32, #tpu.memory_space<vmem>>, vector<1x1x128xf32>
    %26 = vector.shape_cast %25 : vector<1x1x128xf32> to vector<1x128xf32>
    %27 = vector.broadcast %26 : vector<1x128xf32> to vector<8x128xf32>
    %28 = arith.addf %24, %27 : vector<8x128xf32>
    %cst_21 = arith.constant 0.000000e+00 : f32
    %29 = vector.broadcast %cst_21 : f32 to vector<8x128xf32>
    %30 = arith.maximumf %28, %29 : vector<8x128xf32>
    %c0_22 = arith.constant 0 : index
    %c0_23 = arith.constant 0 : index
    %31 = vector.load %arg3[%c0_22, %c0_23] : memref<8x128xf32, #tpu.memory_space<vmem>>, vector<8x128xf32>
    tpu.vector_store %arg3[%c0_22, %c0_23], %30 {strides = array<i32>} : memref<8x128xf32, #tpu.memory_space<vmem>>, vector<8x128xf32>,
    return
  }
}

</mosaic_0001>

<bundles_post_ra>
// kernel: net_forward.1
= control target key start
LH: loop header
LB: loop body
LE: loop exit
PB: predicated region body
PF: predicated region fallthrough
CT: control target
= control target key end

     0   :  { %8 = vsyncpa [#allocation3], 0  ;;  %s676_s0 = inlined_call_operand.vmem [shape: f32[8,128], index: 0, kind: input, shape index: {}]   ;;  %s677_s1 = inlined_call_operand.hbm [shape: bf16[3,128,128], index: 1, kind: input, shape index: {}]   ;;  %s678_s2 = inlined_call_operand.vmem [shape: f32[3,1,128], index: 2, kind: input, shape index: {}]   ;;  %s679_s3 = inlined_call_operand.hbm [shape: f32[8,128], index: 3, kind: output, shape index: {}]  }
   0x1   :  { %9 = vsyncpa [#allocation4], 0  ;;  %s584_s12 = smov [#allocation2]   ;;  %s536_s16 = scalar_lea.hbm %s677_s1, 3072 }
   0x2   :  { %s17_s13 = sshll.u32 %s584_s12, 4  ;;  %p537_p0 = scmp.ne.s32.totalorder %s677_s1, %s536_s16  ;;  %s18_s13 = int_to_ptr.vmem [resolvable:$true] %s17_s13 }
   0x3   :  { %p540_p1 = scmp.lt.u32.totalorder %s536_s16, %s677_s1 }
   0x5   :  { %p542_p2 = pnand %p540_p1, %p537_p0 }
   0x7   :  { %545 = shalt.err (!%p542_p2)
}
   0x8   :  { %s546_s21 = scalar_lea.vmem %s18_s13, 3072  ;;  %p551_p4 = scmp.lt.s32.totalorder %s18_s13, %s18_s13 }
   0x9   :  { %p547_p3 = scmp.ne.s32.totalorder %s18_s13, %s546_s21  ;;  %p552_p5 = scmp.lt.s32.totalorder %s546_s21, %s546_s21 }
   0xb   :  { %p553_p6 = por %p552_p5, %p551_p4 }
   0xd   :  { %p554_p7 = pnand %p553_p6, %p547_p3 }
   0xf   :  { %557 = shalt.err (!%p554_p7)
}
  0x10   :  { %s585_s22 = smov 64   ;;  %s586_s23 = smov 4  }
  0x11   :  { %23 = dma.hbm_to_vmem [thread:$0]  %s677_s1, 3072, %s18_s13, [#allocation3], %s585_s22, %s585_s22, %s586_s23  }
  0x12   :  { %580 = dma.done.wait [#allocation3], 3072  }
  0x13   :  { %581 = vsyncadd [#allocation3], 4294964224  ;;  %v587_v0 = vmov 0.0   ;;  %vm588_vm0 = vmmov 0   ;;  %v512_v1 = vld [vmem:[#allocation2] sm:$0xff]   ;;  %v513_v2 = vld [vmem:[#allocation2 + $0x8] sm:$0xff]  }
  0x14   :  { %446 = vmatprep.subr.bf16.mxu0 %v587_v0  ;;  %462 = vmatprep.mubr.msk.bf16.mxu0 %vm588_vm0, %v587_v0  ;;  %v514_v3 = vld [vmem:[#allocation2 + $0x10] sm:$0xff]   ;;  %v520_v4 = vld [vmem:[#allocation2 + $0x40] sm:$0xff]   ;;  %v515_v5 = vld [vmem:[#allocation2 + $0x18] sm:$0xff]   ;;  %s589_s5 = smov [#allocation5]  }
  0x15   :  { %466 = vmatprep.subr.bf16.mxu1 %v587_v0  ;;  %482 = vmatprep.mubr.msk.bf16.mxu1 %vm588_vm0, %v587_v0  ;;  %v521_v6 = vld [vmem:[#allocation2 + $0x48] sm:$0xff]   ;;  %v516_v7 = vld [vmem:[#allocation2 + $0x20] sm:$0xff]   ;;  %v522_v8 = vld [vmem:[#allocation2 + $0x50] sm:$0xff]   ;;  %s381_s6 = sshll.u32 %s589_s5, 4  ;;  %s382_s6 = int_to_ptr.vmem [resolvable:$true] %s381_s6 }
  0x16   :  { %447 = vmatpush3.bf16.msra.mxu0 %v512_v1  ;;  %467 = vmatpush3.bf16.msra.mxu1 %v520_v4  ;;  %v517_v9 = vld [vmem:[#allocation2 + $0x28] sm:$0xff]   ;;  %v523_v10 = vld [vmem:[#allocation2 + $0x58] sm:$0xff]   ;;  %v518_v11 = vld [vmem:[#allocation2 + $0x30] sm:$0xff]   ;;  %s558_s7 = scalar_lea.vmem %s382_s6, 128  ;;  %p563_p9 = scmp.lt.s32.totalorder %s382_s6, %s382_s6 }
  0x17   :  { %448 = vmatprep.subr.bf16.mxu0 %v587_v0  ;;  %468 = vmatprep.subr.bf16.mxu1 %v587_v0  ;;  %v524_v12 = vld [vmem:[#allocation2 + $0x60] sm:$0xff]   ;;  %v519_v13 = vld [vmem:[#allocation2 + $0x38] sm:$0xff]   ;;  %v525_v15 = vld [vmem:[#allocation2 + $0x68] sm:$0xff]   ;;  %p559_p8 = scmp.ne.s32.totalorder %s382_s6, %s558_s7  ;;  %p564_p10 = scmp.lt.s32.totalorder %s558_s7, %s558_s7 }
  0x18   :  { %v30_v14 = vld [vmem:[%s676_s0] sm:$0xff]  ;;  %v526_v17 = vld [vmem:[#allocation2 + $0x70] sm:$0xff]   ;;  %v527_v18 = vld [vmem:[#allocation2 + $0x78] sm:$0xff]  }
  0x19   :  { %v31_v16 = vpack.c.bf16 %v30_v14, %v30_v14  ;;  %v528_v19 = vld [vmem:[#allocation2 + $0x80] sm:$0xff]   ;;  %v529_v20 = vld [vmem:[#allocation2 + $0x88] sm:$0xff]   ;;  %v530_v21 = vld [vmem:[#allocation2 + $0x90] sm:$0xff]   ;;  %p565_p11 = por %p564_p10, %p563_p9 }
  0x1a   :  { %449 = vmatpush3.bf16.msra.mxu0 %v513_v2  ;;  %469 = vmatpush3.bf16.msra.mxu1 %v521_v6  ;;  %v531_v22 = vld [vmem:[#allocation2 + $0x98] sm:$0xff]   ;;  %v532_v23 = vld [vmem:[#allocation2 + $0xa0] sm:$0xff]   ;;  %v533_v24 = vld [vmem:[#allocation2 + $0xa8] sm:$0xff]  }
  0x1b   :  { %450 = vmatprep.subr.bf16.mxu0 %v587_v0  ;;  %470 = vmatprep.subr.bf16.mxu1 %v587_v0  ;;  %v390_v25 = vld [vmem:[%s678_s2] ss:$0 sm:$0xff]  ;;  %v534_v33 = vld [vmem:[#allocation2 + $0xb0] sm:$0xff]   ;;  %v535_v34 = vld [vmem:[#allocation2 + $0xb8] sm:$0xff]   ;;  %p566_p12 = pnand %p565_p11, %p559_p8 }
  0x1c   :  { %v400_v35 = vld [vmem:[%s678_s2 + $0x1] ss:$0 sm:$0xff]  ;;  %v410_v43 = vld [vmem:[%s678_s2 + $0x2] ss:$0 sm:$0xff] }
  0x1e   :  { %451 = vmatpush3.bf16.msra.mxu0 %v514_v3  ;;  %471 = vmatpush3.bf16.msra.mxu1 %v522_v8 }
  0x1f   :  { %452 = vmatprep.subr.bf16.mxu0 %v587_v0  ;;  %472 = vmatprep.subr.bf16.mxu1 %v587_v0 }
  0x22   :  { %453 = vmatpush3.bf16.msra.mxu0 %v515_v5  ;;  %473 = vmatpush3.bf16.msra.mxu1 %v523_v10 }
  0x23   :  { %454 = vmatprep.subr.bf16.mxu0 %v587_v0  ;;  %474 = vmatprep.subr.bf16.mxu1 %v587_v0 }
  0x26   :  { %455 = vmatpush3.bf16.msra.mxu0 %v516_v7  ;;  %475 = vmatpush3.bf16.msra.mxu1 %v524_v12 }
  0x27   :  { %456 = vmatprep.subr.bf16.mxu0 %v587_v0  ;;  %476 = vmatprep.subr.bf16.mxu1 %v587_v0 }
  0x2a   :  { %457 = vmatpush3.bf16.msra.mxu0 %v517_v9  ;;  %477 = vmatpush3.bf16.msra.mxu1 %v525_v15 }
  0x2b   :  { %458 = vmatprep.subr.bf16.mxu0 %v587_v0  ;;  %478 = vmatprep.subr.bf16.mxu1 %v587_v0 }
  0x2e   :  { %459 = vmatpush3.bf16.msra.mxu0 %v518_v11  ;;  %479 = vmatpush3.bf16.msra.mxu1 %v526_v17 }
  0x2f   :  { %460 = vmatprep.subr.bf16.mxu0 %v587_v0  ;;  %480 = vmatprep.subr.bf16.mxu1 %v587_v0 }
  0x32   :  { %461 = vmatpush3.bf16.msra.mxu0 %v519_v13  ;;  %481 = vmatpush3.bf16.msra.mxu1 %v527_v18 }
  0x33   :  { %486 = vmatprep.subr.bf16.mxu0 %v587_v0 }
  0x35   :  { %463 = vmatmul.mubr.bf16.vlgmr.msra.gmra.mrb[0].mxu0 %v31_v16 }
  0x36   :  { %502 = vmatprep.mubr.msk.bf16.mxu0 %vm588_vm0, %v587_v0  ;;  %487 = vmatpush3.bf16.msra.mxu0 %v528_v19 }
  0x37   :  { %488 = vmatprep.subr.bf16.mxu0 %v587_v0 }
  0x3a   :  { %489 = vmatpush3.bf16.msra.mxu0 %v529_v20 }
  0x3b   :  { %490 = vmatprep.subr.bf16.mxu0 %v587_v0 }
  0x3e   :  { %491 = vmatpush3.bf16.msra.mxu0 %v530_v21 }
  0x3f   :  { %492 = vmatprep.subr.bf16.mxu0 %v587_v0 }
  0x42   :  { %493 = vmatpush3.bf16.msra.mxu0 %v531_v22 }
  0x43   :  { %494 = vmatprep.subr.bf16.mxu0 %v587_v0 }
  0x46   :  { %495 = vmatpush3.bf16.msra.mxu0 %v532_v23 }
  0x47   :  { %496 = vmatprep.subr.bf16.mxu0 %v587_v0 }
  0x4a   :  { %497 = vmatpush3.bf16.msra.mxu0 %v533_v24 }
  0x4b   :  { %498 = vmatprep.subr.bf16.mxu0 %v587_v0 }
  0x4e   :  { %499 = vmatpush3.bf16.msra.mxu0 %v534_v33 }
  0x4f   :  { %500 = vmatprep.subr.bf16.mxu0 %v587_v0 }
  0x52   :  { %501 = vmatpush3.bf16.msra.mxu0 %v535_v34 }
 0x108   :  { %v137_v26 = vpop.f32.mrb[0].mxu0 }
 0x109   :  { %v138_v27 = vadd.f32 %v390_v25, %v137_v26  ;;  %v464_v28 = vpop.f32.mrb[1].mxu0 }
 0x10a   :  { %v140_v29 = vpop.f32.mrb[2].mxu0 }
 0x10b   :  { %v143_v30 = vmax.f32 %v138_v27, 0.0  ;;  %v465_v31 = vpop.f32.mrb[3].mxu0 }
 0x10d   :  { %v144_v32 = vpack.c.bf16 %v143_v30, %v143_v30 }
 0x10f   :  { %483 = vmatmul.mubr.bf16.vlgmr.msra.gmra.mrb[0].mxu1 %v144_v32 }
 0x1e2   :  { %v252_v36 = vpop.f32.mrb[0].mxu1 }
 0x1e3   :  { %v253_v37 = vadd.f32 %v400_v35, %v252_v36  ;;  %v484_v38 = vpop.f32.mrb[1].mxu1 }
 0x1e4   :  { %v255_v39 = vpop.f32.mrb[2].mxu1 }
 0x1e5   :  { %v258_v40 = vmax.f32 %v253_v37, 0.0  ;;  %v485_v41 = vpop.f32.mrb[3].mxu1 }
 0x1e7   :  { %v259_v42 = vpack.c.bf16 %v258_v40, %v258_v40 }
 0x1e9   :  { %503 = vmatmul.mubr.bf16.vlgmr.msra.gmra.mrb[4].mxu0 %v259_v42 }
 0x2bc   :  { %v367_v44 = vpop.f32.mrb[4].mxu0 }
 0x2bd   :  { %v368_v45 = vadd.f32 %v410_v43, %v367_v44  ;;  %v504_v46 = vpop.f32.mrb[5].mxu0 }
 0x2be   :  { %v370_v47 = vpop.f32.mrb[6].mxu0 }
 0x2bf   :  { %v373_v48 = vmax.f32 %v368_v45, 0.0  ;;  %v505_v49 = vpop.f32.mrb[7].mxu0 }
 0x2c1   :  { %374 = vst [vmem:[#allocation5] sm:$0xff] %v373_v48 }
 0x2c2   :  { %569 = shalt.err (!%p566_p12)
}
 0x2c3   :  { %s570_s2 = scalar_lea.hbm %s679_s3, 128 }
 0x2c4   :  { %p571_p13 = scmp.ne.s32.totalorder %s679_s3, %s570_s2  ;;  %p574_p0 = scmp.lt.u32.totalorder %s570_s2, %s679_s3 }
 0x2c6   :  { %p576_p1 = pnand %p574_p0, %p571_p13 }
 0x2c8   :  { %579 = shalt.err (!%p576_p1)
}
 0x2c9   :  { %384 = dma.vmem_to_hbm [thread:$0]  %s382_s6, 128, %s679_s3, [#allocation4]  }
 0x2ca   :  { %582 = dma.done.wait [#allocation4], 128  }
 0x2cb   :  { %583 = vsyncadd [#allocation4], 4294967168 }
 0x2cc   :  { %388 = vsyncpa [#allocation3], 1 }
 0x2cd   :  { %389 = vsyncpa [#allocation4], 1 }

</bundles_post_ra>
